<compile_context>
chip_gen: v6e
topology: v6e:2x2x1
jax: 0.10.0
libtpu: 0.0.40
codegen_flags: <defaults>
</compile_context>

<pallas_src>
import jax
import jax.numpy as jnp
from jax import lax
from jax.experimental import pallas as pl
from jax.experimental.pallas import tpu as pltpu

BN_EPS = 1e-5


def _gated_conv_matmul_kernel(p_ref, w_ref, bg_ref, conv_ref, stats_ref):
    """Pass 1: fused feat/gate conv matmul + partial BN statistics.

    p_ref:     [tm, CKK]     bf16 im2col patches of the upsampled input
    w_ref:     [CKK, 2*OCp]  bf16 weights: [:, :OCp] = feat, [:, OCp:] = gate
    bg_ref:    [8, OCp]      f32, row 0 = gate conv bias
    conv_ref:  [tm, 2*OCp]   f32 out: [:, :OCp] raw feat conv,
                             [:, OCp:] sigmoid(gate conv + bias)
    stats_ref: [8, OCp]      f32 out: row 0 = partial sum, row 1 = partial
                             sum-of-squares of the feat conv over this tile
    """
    ocp = stats_ref.shape[-1]
    acc = jnp.dot(p_ref[...], w_ref[...], preferred_element_type=jnp.float32)
    feat = acc[:, :ocp]
    gate = jax.nn.sigmoid(acc[:, ocp:] + bg_ref[0:1, :])
    conv_ref[:, :ocp] = feat
    conv_ref[:, ocp:] = gate
    s = jnp.sum(feat, axis=0, keepdims=True)
    s2 = jnp.sum(feat * feat, axis=0, keepdims=True)
    stats_ref[...] = jnp.concatenate(
        [s, s2, jnp.zeros((6, ocp), jnp.float32)], axis=0)


def _bn_relu_gate_kernel(conv_ref, ss_ref, o_ref):
    """Pass 2: out = relu(feat * scale + shift) * gate.

    conv_ref: [tm, 2*OCp]  f32 (raw feat conv | sigmoid gate)
    ss_ref:   [8, OCp]     f32: row 0 = gamma*rsqrt(var+eps), row 1 = beta - mean*scale
    o_ref:    [tm, OCp]    f32 output
    """
    ocp = o_ref.shape[-1]
    feat = conv_ref[:, :ocp]
    gate = conv_ref[:, ocp:]
    scale = ss_ref[0:1, :]
    shift = ss_ref[1:2, :]
    o_ref[...] = (jnp.maximum(feat * scale + shift, 0.0) * gate).astype(o_ref.dtype)


def _im2col(x, k, stride, padding):
    # x: [N, C, H, W] -> patches: [N*OH*OW, C*K*K], feature order (c, kh, kw)
    n, c, h, w = x.shape
    xp = jnp.pad(x, ((0, 0), (0, 0), (padding, padding), (padding, padding)))
    oh = (h + 2 * padding - k) // stride + 1
    ow = (w + 2 * padding - k) // stride + 1
    cols = []
    for kh in range(k):
        for kw in range(k):
            cols.append(xp[:, :, kh:kh + (oh - 1) * stride + 1:stride,
                              kw:kw + (ow - 1) * stride + 1:stride])
    patches = jnp.stack(cols, axis=2)                 # [N, C, K*K, OH, OW]
    patches = patches.transpose(0, 3, 4, 1, 2)        # [N, OH, OW, C, K*K]
    return patches.reshape(n * oh * ow, c * k * k), oh, ow


def upsample_gated_conv2d_forward(x, w_feat, b_feat, w_gate, b_gate, gamma, beta,
                                  *, stride=1, padding=0, scale_factor=2,
                                  block_m=256, eps=BN_EPS):
    """Forward of UpsampleGatedConv2d (nearest upsample -> gated conv, relu + train-mode BN).

    x:      [N, C, H, W]        (NCHW, matching PyTorch)
    w_feat: [OC, C, K, K]       feat-branch conv weight
    b_feat: [OC]                feat-branch conv bias (exactly cancelled by BN -> unused)
    w_gate: [OC, C, K, K]       gate-branch conv weight
    b_gate: [OC]                gate-branch conv bias
    gamma:  [OC]                BN weight
    beta:   [OC]                BN bias
    returns [N, OC, H*scale, W*scale] (for stride=1, padding=(K-1)//2)
    """
    del b_feat  # cancels exactly in train-mode BatchNorm: (x + b) - mean(x + b) == x - mean(x)

    n, c, h, w = x.shape
    oc = w_feat.shape[0]
    k = w_feat.shape[2]

    # Nearest-neighbour upsample (integer scale factor) -- pure replication, exact in bf16.
    xb = x.astype(jnp.bfloat16)
    x_up = jnp.repeat(jnp.repeat(xb, scale_factor, axis=2), scale_factor, axis=3)

    patches, oh, ow = _im2col(x_up, k, stride, padding)       # [M, CKK] bf16
    m, ckk = patches.shape
    ocp = ((oc + 127) // 128) * 128                           # lane-dense output width

    # Pad the row axis to a multiple of the tile.  Zero rows contribute nothing
    # to the BN sums because the feat branch carries no bias.
    m_pad = pl.cdiv(m, block_m) * block_m
    if m_pad != m:
        patches = jnp.pad(patches, ((0, m_pad - m), (0, 0)))
    t = m_pad // block_m

    def pad_oc(a):
        return jnp.pad(a, [(0, 0)] * (a.ndim - 1) + [(0, ocp - oc)])

    wf = pad_oc(w_feat.reshape(oc, ckk).T.astype(jnp.bfloat16))   # [CKK, OCp]
    wg = pad_oc(w_gate.reshape(oc, ckk).T.astype(jnp.bfloat16))   # [CKK, OCp]
    w_cat = jnp.concatenate([wf, wg], axis=1)                     # [CKK, 2*OCp]

    bg = jnp.zeros((8, ocp), jnp.float32).at[0, :oc].set(b_gate.astype(jnp.float32))

    # ---- Pass 1: tiled conv matmuls + partial BN statistics -------------------
    conv_out, stats = pl.pallas_call(
        _gated_conv_matmul_kernel,
        out_shape=(jax.ShapeDtypeStruct((m_pad, 2 * ocp), jnp.float32),
                   jax.ShapeDtypeStruct((t * 8, ocp), jnp.float32)),
        grid_spec=pltpu.PrefetchScalarGridSpec(
            num_scalar_prefetch=0,
            grid=(t,),
            in_specs=[
                pl.BlockSpec((block_m, ckk), lambda i: (i, 0)),
                pl.BlockSpec((ckk, 2 * ocp), lambda i: (0, 0)),
                pl.BlockSpec((8, ocp), lambda i: (0, 0)),
            ],
            out_specs=(
                pl.BlockSpec((block_m, 2 * ocp), lambda i: (i, 0)),
                pl.BlockSpec((8, ocp), lambda i: (i, 0)),
            ),
        ),
        compiler_params=pltpu.CompilerParams(
            dimension_semantics=("parallel",)),
    )(patches, w_cat, bg)

    # ---- Reduce partial stats -> fused train-mode BN scale/shift (tiny, f32) --
    stats = stats.reshape(t, 8, ocp)
    total = jnp.sum(stats[:, 0, :], axis=0)
    total_sq = jnp.sum(stats[:, 1, :], axis=0)
    mean = total / m
    var = total_sq / m - mean * mean                   # biased variance (BN forward)
    scale = pad_oc(gamma.astype(jnp.float32)) * lax.rsqrt(var + eps)
    shift = pad_oc(beta.astype(jnp.float32)) - mean * scale
    ss = jnp.zeros((8, ocp), jnp.float32).at[0].set(scale).at[1].set(shift)

    # ---- Pass 2: apply BN + ReLU + gating, lane-dense output ------------------
    out2d = pl.pallas_call(
        _bn_relu_gate_kernel,
        out_shape=jax.ShapeDtypeStruct((m_pad, ocp), jnp.float32),
        grid_spec=pltpu.PrefetchScalarGridSpec(
            num_scalar_prefetch=0,
            grid=(t,),
            in_specs=[
                pl.BlockSpec((block_m, 2 * ocp), lambda i: (i, 0)),
                pl.BlockSpec((8, ocp), lambda i: (0, 0)),
            ],
            out_specs=pl.BlockSpec((block_m, ocp), lambda i: (i, 0)),
        ),
        compiler_params=pltpu.CompilerParams(
            dimension_semantics=("parallel",)),
    )(conv_out, ss)

    # [M_pad, OCp] -> [N, OH, OW, OC] -> NCHW
    out = out2d[:m, :oc].reshape(n, oh, ow, oc).transpose(0, 3, 1, 2)
    return out


if __name__ == "__main__":
    key = jax.random.PRNGKey(0)
    kx, kwf, kbf, kwg, kbg, kg, kb = jax.random.split(key, 7)

    # UpsampleGatedConv2d(4, 8, 3, stride=1, padding=1, activation='relu',
    #                     batch_norm=True, scale_factor=2, upsampling_mode='nearest')
    N, C, H, W = 2, 4, 16, 16
    OC, K = 8, 3
    stride, padding, scale_factor = 1, 1, 2

    x = jax.random.normal(kx, (N, C, H, W), dtype=jnp.float32)

    fan_in = C * K * K
    bound = 1.0 / (fan_in ** 0.5)
    w_feat = jax.random.uniform(kwf, (OC, C, K, K), minval=-bound, maxval=bound, dtype=jnp.float32)
    b_feat = jax.random.uniform(kbf, (OC,), minval=-bound, maxval=bound, dtype=jnp.float32)
    w_gate = jax.random.uniform(kwg, (OC, C, K, K), minval=-bound, maxval=bound, dtype=jnp.float32)
    b_gate = jax.random.uniform(kbg, (OC,), minval=-bound, maxval=bound, dtype=jnp.float32)
    gamma = 1.0 + 0.1 * jax.random.normal(kg, (OC,), dtype=jnp.float32)
    beta = 0.1 * jax.random.normal(kb, (OC,), dtype=jnp.float32)

    out = upsample_gated_conv2d_forward(
        x, w_feat, b_feat, w_gate, b_gate, gamma, beta,
        stride=stride, padding=padding, scale_factor=scale_factor)
    jax.block_until_ready(out)

    # ---- Pure-JAX reference (inputs quantized to bf16 like the kernel's MXU path) ----
    xq = x.astype(jnp.bfloat16).astype(jnp.float32)
    wfq = w_feat.astype(jnp.bfloat16).astype(jnp.float32)
    wgq = w_gate.astype(jnp.bfloat16).astype(jnp.float32)
    x_up = jnp.repeat(jnp.repeat(xq, scale_factor, axis=2), scale_factor, axis=3)

    def conv(inp, wgt, b):
        y = lax.conv_general_dilated(
            inp, wgt, window_strides=(stride, stride),
            padding=[(padding, padding), (padding, padding)],
            dimension_numbers=("NCHW", "OIHW", "NCHW"),
            precision=lax.Precision.HIGHEST)
        return y + b.reshape(1, OC, 1, 1)

    feat = conv(x_up, wfq, b_feat)
    mu = feat.mean(axis=(0, 2, 3), keepdims=True)
    var = feat.var(axis=(0, 2, 3), keepdims=True)
    feat = jnp.maximum(
        (feat - mu) * lax.rsqrt(var + BN_EPS) * gamma.reshape(1, OC, 1, 1)
        + beta.reshape(1, OC, 1, 1), 0.0)
    gate = jax.nn.sigmoid(conv(x_up, wgq, b_gate))
    ref = feat * gate

    assert out.shape == (N, OC, H * scale_factor, W * scale_factor)
    err = float(jnp.max(jnp.abs(out - ref)))
    assert err < 2e-3, f"max abs err {err}"
    print("KERNEL_OK")
</pallas_src>

<mosaic_0001>
module attributes {stable_mosaic.version = 11 : i64} {
  func.func @_gated_conv_matmul_kernel(%arg0: i32, %arg1: memref<256x36xbf16, #tpu.memory_space<vmem>>, %arg2: memref<36x256xbf16, #tpu.memory_space<vmem>>, %arg3: memref<8x128xf32, #tpu.memory_space<vmem>>, %arg4: memref<256x256xf32, #tpu.memory_space<vmem>>, %arg5: memref<8x128xf32, #tpu.memory_space<vmem>>) attributes {dimension_semantics = [#tpu.dimension_semantics<parallel>], iteration_bounds = array<i64: 8>, scalar_prefetch = 0 : i64, scratch_operands = 0 : i64, tpu.core_type = #tpu.core_type<tc>, window_params = [{transform_indices = @transform_0, window_bounds = array<i64: 256, 36>}, {pipeline_mode = #tpu.pipeline_mode<synchronous>, transform_indices = @transform_1, window_bounds = array<i64: 36, 256>}, {pipeline_mode = #tpu.pipeline_mode<synchronous>, transform_indices = @transform_2, window_bounds = array<i64: 8, 128>}, {transform_indices = @transform_3, window_bounds = array<i64: 256, 256>}, {transform_indices = @transform_4, window_bounds = array<i64: 8, 128>}]} {
    %c0 = arith.constant 0 : index
    %c0_0 = arith.constant 0 : index
    %0 = vector.load %arg1[%c0, %c0_0] : memref<256x36xbf16, #tpu.memory_space<vmem>>, vector<256x36xbf16>
    %c0_1 = arith.constant 0 : index
    %c0_2 = arith.constant 0 : index
    %1 = vector.load %arg2[%c0_1, %c0_2] : memref<36x256xbf16, #tpu.memory_space<vmem>>, vector<36x256xbf16>
    %cst = arith.constant dense<0.000000e+00> : vector<256x256xf32>
    %2 = tpu.matmul %0, %1, %cst {dimension_numbers = #tpu.dot_dimension_numbers<[1], [0], [0], [1], [0, 0, 1, 1], [], []>} : vector<256x36xbf16>, vector<36x256xbf16>, vector<256x256xf32> -> vector<256x256xf32>
    %3 = vector.extract_strided_slice %2 {offsets = [0, 0], sizes = [256, 128], strides = [1, 1]} : vector<256x256xf32> to vector<256x128xf32>
    %4 = vector.extract_strided_slice %2 {offsets = [0, 128], sizes = [256, 128], strides = [1, 1]} : vector<256x256xf32> to vector<256x128xf32>
    %c0_3 = arith.constant 0 : index
    %c0_4 = arith.constant 0 : index
    %5 = vector.load %arg3[%c0_3, %c0_4] : memref<8x128xf32, #tpu.memory_space<vmem>>, vector<1x128xf32>
    %6 = vector.broadcast %5 : vector<1x128xf32> to vector<256x128xf32>
    %7 = arith.addf %4, %6 : vector<256x128xf32>
    %8 = arith.negf %7 : vector<256x128xf32>
    %9 = math.exp %8 : vector<256x128xf32>
    %cst_5 = arith.constant 1.000000e+00 : f32
    %10 = vector.broadcast %cst_5 : f32 to vector<256x128xf32>
    %11 = arith.addf %10, %9 : vector<256x128xf32>
    %12 = arith.divf %10, %11 : vector<256x128xf32>
    %c0_6 = arith.constant 0 : index
    %c0_7 = arith.constant 0 : index
    %13 = vector.load %arg4[%c0_6, %c0_7] : memref<256x256xf32, #tpu.memory_space<vmem>>, vector<256x128xf32>
    tpu.vector_store %arg4[%c0_6, %c0_7], %3 {strides = array<i32>} : memref<256x256xf32, #tpu.memory_space<vmem>>, vector<256x128xf32>,
    %c0_8 = arith.constant 0 : index
    %c128 = arith.constant 128 : index
    %14 = vector.load %arg4[%c0_8, %c128] : memref<256x256xf32, #tpu.memory_space<vmem>>, vector<256x128xf32>
    tpu.vector_store %arg4[%c0_8, %c128], %12 {strides = array<i32>} : memref<256x256xf32, #tpu.memory_space<vmem>>, vector<256x128xf32>,
    %cst_9 = arith.constant dense<0.000000e+00> : vector<128xf32>
    %15 = vector.multi_reduction <add>, %3, %cst_9 [0] : vector<256x128xf32> to vector<128xf32>
    %16 = vector.shape_cast %15 : vector<128xf32> to vector<1x128xf32>
    %17 = arith.mulf %3, %3 : vector<256x128xf32>
    %cst_10 = arith.constant dense<0.000000e+00> : vector<128xf32>
    %18 = vector.multi_reduction <add>, %17, %cst_10 [0] : vector<256x128xf32> to vector<128xf32>
    %19 = vector.shape_cast %18 : vector<128xf32> to vector<1x128xf32>
    %cst_11 = arith.constant 0.000000e+00 : f32
    %20 = vector.broadcast %cst_11 : f32 to vector<6x128xf32>
    %21 = tpu.concatenate %16, %19, %20 in 0 : vector<1x128xf32>, vector<1x128xf32>, vector<6x128xf32> -> vector<8x128xf32>
    %c0_12 = arith.constant 0 : index
    %c0_13 = arith.constant 0 : index
    %22 = vector.load %arg5[%c0_12, %c0_13] : memref<8x128xf32, #tpu.memory_space<vmem>>, vector<8x128xf32>
    tpu.vector_store %arg5[%c0_12, %c0_13], %21 {strides = array<i32>} : memref<8x128xf32, #tpu.memory_space<vmem>>, vector<8x128xf32>,
    return
  }
  func.func @transform_0(%arg0: i32) -> (i32, i32) {
    %c0_i32 = arith.constant 0 : i32
    %c0_i32_0 = arith.constant 0 : i32
    return %arg0, %c0_i32 : i32, i32
  }
  func.func @transform_1(%arg0: i32) -> (i32, i32) {
    %c0_i32 = arith.constant 0 : i32
    %c0_i32_0 = arith.constant 0 : i32
    %c0_i32_1 = arith.constant 0 : i32
    return %c0_i32, %c0_i32_0 : i32, i32
  }
  func.func @transform_2(%arg0: i32) -> (i32, i32) {
    %c0_i32 = arith.constant 0 : i32
    %c0_i32_0 = arith.constant 0 : i32
    %c0_i32_1 = arith.constant 0 : i32
    return %c0_i32, %c0_i32_0 : i32, i32
  }
  func.func @transform_3(%arg0: i32) -> (i32, i32) {
    %c0_i32 = arith.constant 0 : i32
    %c0_i32_0 = arith.constant 0 : i32
    return %arg0, %c0_i32 : i32, i32
  }
  func.func @transform_4(%arg0: i32) -> (i32, i32) {
    %c0_i32 = arith.constant 0 : i32
    %c0_i32_0 = arith.constant 0 : i32
    return %arg0, %c0_i32 : i32, i32
  }
}

</mosaic_0001>

<bundles_post_ra>
// kernel: tpu_custom_call.1
= control target key start
LH: loop header
LB: loop body
LE: loop exit
PB: predicated region body
PF: predicated region fallthrough
CT: control target
= control target key end

     0   :  { %10 = vsyncpa [#allocation3], 0  ;;  %s2166_s0 = inlined_call_operand.vmem [shape: bf16[2048,36], index: 0, kind: input, shape index: {}]   ;;  %s2167_s1 = inlined_call_operand.hbm [shape: bf16[36,256], index: 1, kind: input, shape index: {}]   ;;  %s2168_s2 = inlined_call_operand.hbm [shape: f32[8,128], index: 2, kind: input, shape index: {}]   ;;  %s2169_s3 = inlined_call_operand.hbm [shape: f32[2048,256], index: 3, kind: output, shape index: {0}]   ;;  %s2170_s4 = inlined_call_operand.hbm [shape: f32[64,128], index: 4, kind: output, shape index: {1}]  }
   0x1   :  { %11 = vsyncpa [#allocation6], 0 }
   0x2   :  { %12 = vsyncpa [#allocation4], 0 }
   0x3   :  { %14 = vsyncpa [#allocation4 + $0x1], 0 }
   0x4   :  { %15 = vsyncpa [#allocation9], 0 }
   0x5   :  { %17 = vsyncpa [#allocation9 + $0x1], 0  ;;  %s1690_s15 = smov 0   ;;  %s1692_s16 = smov 0  }
   0x6   :  { %s1694_s17 = smov 0   ;;  %s1696_s18 = smov 0  }
   0x7 LB: > { %s1711_s19 = sadd.s32 4294967295, %s1654_s18   ;;  %s1182_s20 = sadd.s32 4294967294, %s1654_s18   ;;  %s1654_s18 = sphi %s1696_s18, %s2184_s18   ;;  %s1650_s17 = sphi %s1694_s17, %s2183_s17   ;;  %s1646_s16 = sphi %s1692_s16, %s2182_s16   ;;  %s1642_s15 = sphi %s1690_s15, %s2181_s15  }
   0x8   : > { %s1715_s21 = sadd.s32 1, %s1654_s18   ;;  %s98_s22 = sadd.s32 1, %s1650_s17 }
   0x9   : > { %s95_s23 = ssub.s32 %s1654_s18, %s1715_s21  ;;  %p108_p0 = scmp.ne.s32.totalorder %s1650_s17, %s1646_s16 }
   0xa   : > { %p96_p1 = scmp.eq.s32.totalorder %s95_s23, 0  ;;  %p109_p2 = scmp.eq.s32.totalorder %s1711_s19, 7 }
   0xb   : > { %p114_p3 = scmp.ne.s32.totalorder %s1646_s16, %s1642_s15  ;;  %p115_p4 = scmp.eq.s32.totalorder %s1182_s20, 7 }
   0xc   : > { %s1726_s24 = scalar_select %p96_p1, %s1650_s17, %s98_s22  }
   0xd   : > { %p1728_p5 = por %p109_p2, %p108_p0  ;;  %p1732_p6 = por %p115_p4, %p114_p3 }
   0xe   : > { %p1183_p7 = scmp.ge.s32.totalorder %s1654_s18, 1  ;;  %p148_p8 = scmp.lt.s32.totalorder %s1654_s18, 9 }
   0xf   : > { %s2173_s26 = scalar_select %p1732_p6, 1, 0 }
  0x10   : > { %p2171_p9 = scmp.eq.s32.totalorder %s1711_s19, 0  ;;  %p1739_p10 = pnand %p1183_p7, %p148_p8 }
  0x11   : > { %s1656_s28 = smov [#allocation2]   ;;  %s1657_s5 = smov [#allocation5]  }
  0x12   : > { %s160_s29 = sshll.u32 %s1656_s28, 4  ;;  %p1294_p11 = pneg %p1739_p10  ;;  %s161_s29 = int_to_ptr.vmem [resolvable:$true] %s160_s29 }
  0x13   : > { %s174_s6 = sshll.u32 %s1657_s5, 4  ;;  %s1515_s7 = scalar_lea.vmem %s161_s29, 640  ;;  %s175_s6 = int_to_ptr.vmem [resolvable:$true] %s174_s6 }
  0x14   : > { %p1747_p12 = pnand %p2171_p9, %p1294_p11  ;;  %p1516_p0 = scmp.ne.s32.totalorder %s161_s29, %s1515_s7 }
  0x15   : > { %p1523_p3 = scmp.lt.s32.totalorder %s161_s29, %s161_s29  ;;  %p1524_p4 = scmp.lt.s32.totalorder %s1515_s7, %s1515_s7 }
  0x16   : > { %p1506_p13 = pneg %p1747_p12 }
  0x17   : > { %p1525_p7 = por %p1524_p4, %p1523_p3 }
  0x18   : > { %p1518_p1 = pnand %p1516_p0, %p1506_p13 }
  0x1a   : > { %p1519_p2 = pneg %p1518_p1 }
  0x1c   : > { %p1526_p8 = pnand %p1525_p7, %p1519_p2 }
  0x1e   : > { %1529 = shalt.err (!%p1526_p8)
}
  0x1f   : > { %s1658_s8 = smov 128   ;;  %s1659_s9 = smov 8  }
  0x20   : > { %1297 = dma.hbm_to_vmem [thread:$0]  (!%p1747_p12), %s2167_s1, 640, %s161_s29, [#allocation3], %s1658_s8, %s1658_s8, %s1659_s9  }
  0x21   : > { %s1541_s12 = scalar_lea.vmem %s175_s6, 128  ;;  %p1549_p9 = scmp.lt.s32.totalorder %s175_s6, %s175_s6 }
  0x22   : > { %p1542_p11 = scmp.ne.s32.totalorder %s175_s6, %s1541_s12  ;;  %p1550_p6 = scmp.lt.s32.totalorder %s1541_s12, %s1541_s12 }
  0x24   : > { %p1544_p0 = pnand %p1542_p11, %p1506_p13  ;;  %p1551_p3 = por %p1550_p6, %p1549_p9 }
  0x26   : > { %p1545_p1 = pneg %p1544_p0 }
  0x28   : > { %p1552_p2 = pnand %p1551_p3, %p1545_p1 }
  0x2a   : > { %1555 = shalt.err (!%p1552_p2)
}
  0x2b   : > { %1300 = dma.hbm_to_vmem [thread:$0]  (!%p1747_p12), %s2168_s2, 128, %s175_s6, [#allocation6]  }
  0x2c   : > { %196 = sbr.rel (%p1739_p10) target bundleno = 399 (0x18f), region = 32  ;;  %p2176_p4 = scmp.eq.s32.totalorder (!%p1739_p10), %s1711_s19, 0 }
  0x31   : > { %1625 = dma.done.wait (%p2176_p4), [#allocation3], 640   ;;  %p2177_p13 = pmov %p2176_p4 }
  0x32   : > { %p2178_p7 = pmov %p2176_p4 }
  0x33   : > { %1627 = vsyncadd (%p2177_p13), [#allocation3], 4294966656 }
  0x34   : > { %1629 = dma.done.wait (%p2178_p7), [#allocation6], 128   ;;  %p2179_p6 = pmov %p2176_p4 }
  0x35   : > { %s1192_s20 = sshll.u32 %s1711_s19, 5  ;;  %v1660_v0 = vmov 0   ;;  %v275_v1 = vld [vmem:[#allocation2 + $0x20] sm:$0x33]  ;;  %vm430_vm0 = vcmask 1041408   ;;  %vm381_vm1 = vcmask 293888  }
  0x36   : > { %1631 = vsyncadd (%p2179_p6), [#allocation6], 4294967168  ;;  %469 = vmatprep.mubr.bf16.mxu0 %v1660_v0  ;;  %p232_p9 = scmp.lt.s32.totalorder %s1192_s20, 255  ;;  %549 = vmatprep.mubr.bf16.mxu1 %v1660_v0  ;;  %v1215_v2 = vcombine.high %v275_v1, %v275_v1  ;;  %v1214_v3 = vcombine.low %v275_v1, %v275_v1  ;;  %v1354_v4 = vld [vmem:[#allocation2 + $0x14] ss:$8 sps:$4 sm:$0xff]   ;;  %s1837_s29 = sand.u32 1, %s1646_s16  }
  0x37   : > { %v1356_v6 = vld [vmem:[#allocation2 + $0x10] ss:$8 sps:$4 sm:$0xff]   ;;  %v1357_v7 = vld [vmem:[#allocation2 + $0x4] ss:$8 sps:$4 sm:$0xff]   ;;  %v1359_v8 = vld [vmem:[#allocation2] ss:$8 sps:$4 sm:$0xff]  }
  0x38   : > { %s2186_s20 = smov (!%p232_p9, %s1192_s20), 255  ;;  %1216 = vmatprep.subr.msk.bf16.mxu0 %vm430_vm0, %v1215_v2  ;;  %v432_v5 = vsel %vm430_vm0, %v1214_v3, 0  ;;  %1276 = vmatprep.subr.msk.bf16.mxu1 %vm430_vm0, %v1215_v2  ;;  %s1190_s30 = sshll.u32 %s1837_s29, 9  ;;  %v1842_v26 = vld [vmem:[#allocation5] ss:$0 sm:$0xff] }
  0x39   : > { %s1193_s22 = sshll.u32 %s2186_s20, 2  ;;  %448 = vmatpush1.bf16.msra.mxu0 %v432_v5  ;;  %1279 = vmatpush1.bf16.msra.mxu1 %v432_v5  ;;  %s1846_s5 = scalar_lea.vmem [#allocation7], %s1190_s30 }
  0x3a   : > { %s1785_s28 = scalar_lea.vmem %s2166_s0, %s1193_s22  ;;  %449 = vmatprep.subr.bf16.mxu0 %v1354_v4  ;;  %1277 = vmatprep.subr.bf16.mxu1 %v1354_v4  ;;  %s1275_s6 = sshll.u32 %s1711_s19, 13 }
  0x3b   : > { %v1360_v9 = vld [vmem:[%s1785_s28] sm:$0xff]   ;;  %v1361_v11 = vld [vmem:[%s1785_s28 + $0x8] sm:$0xff]   ;;  %v1363_v13 = vld [vmem:[%s1785_s28 + $0x10] sm:$0xff]   ;;  %s1053_s7 = sshll.u32 %s1846_s5, 4  ;;  %s2093_s10 = scalar_lea.hbm %s2169_s3, %s1275_s6  ;;  %s2095_s7 = int_to_ptr.vmem [resolvable:$true] %s1053_s7 }
  0x3c   : > { %v1362_v10 = vld [vmem:[%s1785_s28 + $0x40] sm:$0xff]   ;;  %v1364_v12 = vld [vmem:[%s1785_s28 + $0x48] sm:$0xff]   ;;  %v1366_v14 = vld [vmem:[%s1785_s28 + $0x50] sm:$0xff]   ;;  %s1191_s11 = sshll.u32 %s1837_s29, 3  ;;  %s1034_s12 = scalar_lea.sflag [#allocation4], %s1837_s29 }
  0x3d   : > { %450 = vmatpush1.bf16.msra.mxu0 %v1356_v6  ;;  %1280 = vmatpush1.bf16.msra.mxu1 %v1356_v6  ;;  %v1365_v15 = vld [vmem:[%s1785_s28 + $0x18] sm:$0xff]   ;;  %v1367_v17 = vld [vmem:[%s1785_s28 + $0x20] sm:$0xff]   ;;  %v1369_v19 = vld [vmem:[%s1785_s28 + $0x28] sm:$0xff]   ;;  %s1556_s13 = scalar_lea.vmem %s2095_s7, 8192  ;;  %s1661_s14 = smov [#allocation7]  }
  0x3e   : > { %451 = vmatprep.subr.bf16.mxu0 %v1357_v7  ;;  %1278 = vmatprep.subr.bf16.mxu1 %v1357_v7  ;;  %v1368_v16 = vld [vmem:[%s1785_s28 + $0x58] sm:$0xff]   ;;  %v1370_v18 = vld [vmem:[%s1785_s28 + $0x60] sm:$0xff]   ;;  %v1372_v20 = vld [vmem:[%s1785_s28 + $0x68] sm:$0xff]   ;;  %p1557_p10 = scmp.ne.s32.totalorder %s2095_s7, %s1556_s13  ;;  %s1560_s20 = sshll.u32 %s1661_s14, 4  ;;  %s1561_s20 = int_to_ptr.vmem [resolvable:$false] %s1560_s20 }
  0x3f   : > { %v1371_v21 = vld [vmem:[%s1785_s28 + $0x30] sm:$0xff]   ;;  %v1373_v23 = vld [vmem:[%s1785_s28 + $0x38] sm:$0xff]   ;;  %s1562_s22 = scalar_lea.vmem %s1561_s20, 16384  ;;  %p1563_p11 = scmp.lt.s32.totalorder %s2095_s7, %s1561_s20 }
  0x40   : > { %v1374_v22 = vld [vmem:[%s1785_s28 + $0x70] sm:$0xff]   ;;  %v1375_v24 = vld [vmem:[%s1785_s28 + $0x78] sm:$0xff]   ;;  %p1558_p12 = pnand %p1557_p10, %p1728_p5  ;;  %p1564_p0 = scmp.lt.s32.totalorder %s1562_s22, %s1556_s13 }
  0x41   : > { %452 = vmatpush1.bf16.msra.mxu0 %v1359_v8  ;;  %1281 = vmatpush1.bf16.msra.mxu1 %v1359_v8 }
  0x42   : > { %p1559_p8 = pneg %p1558_p12  ;;  %p1565_p1 = por %p1564_p0, %p1563_p11 }
  0x44   : > { %1217 = vmatmul.mubr.msk.bf16.vlgmr.msra.gmra.mxu0 %vm381_vm1, %v1360_v9  ;;  %1225 = vmatmul.mubr.msk.bf16.vlgmr.msra.gmra.mxu1 %vm381_vm1, %v1362_v10  ;;  %p1566_p3 = pnand %p1565_p1, %p1559_p8 }
  0x45   : > { %479 = vmatprep.mubr.bf16.mxu0 %v1660_v0  ;;  %559 = vmatprep.mubr.bf16.mxu1 %v1660_v0 }
  0x4c   : > { %1218 = vmatmul.mubr.msk.bf16.gmra.mxu0 %vm381_vm1, %v1361_v11  ;;  %1226 = vmatmul.mubr.msk.bf16.gmra.mxu1 %vm381_vm1, %v1364_v12 }
  0x4d   : > { %489 = vmatprep.mubr.bf16.mxu0 %v1660_v0  ;;  %569 = vmatprep.mubr.bf16.mxu1 %v1660_v0 }
  0x54   : > { %1219 = vmatmul.mubr.msk.bf16.gmra.mxu0 %vm381_vm1, %v1363_v13  ;;  %1227 = vmatmul.mubr.msk.bf16.gmra.mxu1 %vm381_vm1, %v1366_v14 }
  0x55   : > { %499 = vmatprep.mubr.bf16.mxu0 %v1660_v0  ;;  %579 = vmatprep.mubr.bf16.mxu1 %v1660_v0 }
  0x5c   : > { %1220 = vmatmul.mubr.msk.bf16.gmra.mxu0 %vm381_vm1, %v1365_v15  ;;  %1228 = vmatmul.mubr.msk.bf16.gmra.mxu1 %vm381_vm1, %v1368_v16 }
  0x5d   : > { %509 = vmatprep.mubr.bf16.mxu0 %v1660_v0  ;;  %589 = vmatprep.mubr.bf16.mxu1 %v1660_v0 }
  0x64   : > { %1221 = vmatmul.mubr.msk.bf16.gmra.mxu0 %vm381_vm1, %v1367_v17  ;;  %1229 = vmatmul.mubr.msk.bf16.gmra.mxu1 %vm381_vm1, %v1370_v18 }
  0x65   : > { %519 = vmatprep.mubr.bf16.mxu0 %v1660_v0  ;;  %599 = vmatprep.mubr.bf16.mxu1 %v1660_v0 }
  0x6c   : > { %1222 = vmatmul.mubr.msk.bf16.gmra.mxu0 %vm381_vm1, %v1369_v19  ;;  %1230 = vmatmul.mubr.msk.bf16.gmra.mxu1 %vm381_vm1, %v1372_v20 }
  0x6d   : > { %529 = vmatprep.mubr.bf16.mxu0 %v1660_v0  ;;  %609 = vmatprep.mubr.bf16.mxu1 %v1660_v0 }
  0x74   : > { %1223 = vmatmul.mubr.msk.bf16.gmra.mxu0 %vm381_vm1, %v1371_v21  ;;  %1231 = vmatmul.mubr.msk.bf16.gmra.mxu1 %vm381_vm1, %v1374_v22 }
  0x75   : > { %539 = vmatprep.mubr.bf16.mxu0 %v1660_v0  ;;  %619 = vmatprep.mubr.bf16.mxu1 %v1660_v0 }
  0x7c   : > { %1224 = vmatmul.mubr.msk.bf16.gmra.mxu0 %vm381_vm1, %v1373_v23  ;;  %1232 = vmatmul.mubr.msk.bf16.gmra.mxu1 %vm381_vm1, %v1375_v24 }
 0x104   : > { %v1840_v25 = vpop.f32.mrf.mxu0  ;;  %v1844_v27 = vpop.f32.mrf.mxu1 }
 0x105   : > { %859 = vst [vmem:[%s1846_s5] sm:$0xff] %v1840_v25  ;;  %875 = vst [vmem:[%s1846_s5 + $0x100] sm:$0xff] %v1844_v27  ;;  %v960_v14 = vmul.f32 %v1840_v25, %v1840_v25 }
 0x106   : > { %v473_v28 = vpop.f32.mrf.mxu0  ;;  %v553_v29 = vpop.f32.mrf.mxu1 }
 0x107   : > { %v635_v30 = vadd.f32 %v1842_v26, %v473_v28  ;;  %v651_v31 = vadd.f32 %v1842_v26, %v553_v29 }
 0x108   : > { %v1854_v32 = vpop.f32.mrf.mxu0  ;;  %v1856_v33 = vpop.f32.mrf.mxu1 }
 0x109   : > { %v1234_v34 = vmul.f32 -1.442695, %v635_v30  ;;  %860 = vst [vmem:[%s1846_s5 + $0x10] sm:$0xff] %v1854_v32  ;;  %v1250_v35 = vmul.f32 -1.442695, %v651_v31  ;;  %876 = vst [vmem:[%s1846_s5 + $0x110] sm:$0xff] %v1856_v33  ;;  %v961_v6 = vmul.f32 %v1854_v32, %v1854_v32  ;;  %v923_v19 = vadd.f32 %v1854_v32, %v1840_v25 }
 0x10a   : > { %v477_v36 = vpop.f32.mrf.mxu0  ;;  %v557_v37 = vpop.f32.mrf.mxu1 }
 0x10b   : > { %1376 = vpow2.f32 %v1234_v34  ;;  %v636_v38 = vadd.f32 %v1842_v26, %v477_v36  ;;  %v652_v39 = vadd.f32 %v1842_v26, %v557_v37  ;;  %v992_v22 = vadd.f32 %v961_v6, %v960_v14 }
 0x10c   : > { %v1864_v40 = vpop.f32.mrf.mxu0  ;;  %1378 = vpow2.f32 %v1250_v35  ;;  %v1866_v41 = vpop.f32.mrf.mxu1 }
 0x10d   : > { %v1235_v42 = vmul.f32 -1.442695, %v636_v38  ;;  %861 = vst [vmem:[%s1846_s5 + $0x20] sm:$0xff] %v1864_v40  ;;  %v1251_v43 = vmul.f32 -1.442695, %v652_v39  ;;  %877 = vst [vmem:[%s1846_s5 + $0x120] sm:$0xff] %v1866_v41  ;;  %v962_v15 = vmul.f32 %v1864_v40, %v1864_v40  ;;  %v924_v30 = vadd.f32 %v923_v19, %v1864_v40 }
 0x10e   : > { %v483_v44 = vpop.f32.mrf.mxu0  ;;  %v563_v45 = vpop.f32.mrf.mxu1 }
 0x10f   : > { %1380 = vpow2.f32 %v1235_v42  ;;  %v637_v46 = vadd.f32 %v1842_v26, %v483_v44  ;;  %v653_v47 = vadd.f32 %v1842_v26, %v563_v45  ;;  %v993_v34 = vadd.f32 %v992_v22, %v962_v15 }
 0x110   : > { %v1874_v48 = vpop.f32.mrf.mxu0  ;;  %1382 = vpow2.f32 %v1251_v43  ;;  %v1876_v49 = vpop.f32.mrf.mxu1 }
 0x111   : > { %v1236_v50 = vmul.f32 -1.442695, %v637_v46  ;;  %862 = vst [vmem:[%s1846_s5 + $0x30] sm:$0xff] %v1874_v48  ;;  %v1252_v51 = vmul.f32 -1.442695, %v653_v47  ;;  %878 = vst [vmem:[%s1846_s5 + $0x130] sm:$0xff] %v1876_v49  ;;  %v963_v35 = vmul.f32 %v1874_v48, %v1874_v48  ;;  %v925_v42 = vadd.f32 %v924_v30, %v1874_v48 }
 0x112   : > { %v487_v52 = vpop.f32.mrf.mxu0  ;;  %v567_v53 = vpop.f32.mrf.mxu1 }
 0x113   : > { %1384 = vpow2.f32 %v1236_v50  ;;  %v638_v54 = vadd.f32 %v1842_v26, %v487_v52  ;;  %v654_v55 = vadd.f32 %v1842_v26, %v567_v53  ;;  %v994_v52 = vadd.f32 %v993_v34, %v963_v35 }
 0x114   : > { %v1884_v56 = vpop.f32.mrf.mxu0  ;;  %1386 = vpow2.f32 %v1252_v51  ;;  %v1886_v57 = vpop.f32.mrf.mxu1 }
 0x115   : > { %v1237_v58 = vmul.f32 -1.442695, %v638_v54  ;;  %863 = vst [vmem:[%s1846_s5 + $0x40] sm:$0xff] %v1884_v56  ;;  %v1253_v59 = vmul.f32 -1.442695, %v654_v55  ;;  %879 = vst [vmem:[%s1846_s5 + $0x140] sm:$0xff] %v1886_v57  ;;  %v964_v43 = vmul.f32 %v1884_v56, %v1884_v56  ;;  %v926_v53 = vadd.f32 %v925_v42, %v1884_v56 }
 0x116   : > { %v493_v60 = vpop.f32.mrf.mxu0  ;;  %v573_v61 = vpop.f32.mrf.mxu1 }
 0x117   : > { %1388 = vpow2.f32 %v1237_v58  ;;  %v639_v62 = vadd.f32 %v1842_v26, %v493_v60  ;;  %v655_v63 = vadd.f32 %v1842_v26, %v573_v61 }
 0x118   : > { %v1377_v0 = vpop.eup %1376  ;;  %v1894_v1 = vpop.f32.mrf.mxu0  ;;  %1390 = vpow2.f32 %v1253_v59 }
 0x119   : > { %v1896_v2 = vpop.f32.mrf.mxu1  ;;  %v1379_v3 = vpop.eup %1378  ;;  %v763_v4 = vadd.f32 1.0, %v1377_v0  ;;  %v1238_v5 = vmul.f32 -1.442695, %v639_v62  ;;  %864 = vst [vmem:[%s1846_s5 + $0x50] sm:$0xff] %v1894_v1  ;;  %v1254_v9 = vmul.f32 -1.442695, %v655_v63  ;;  %v965_v60 = vmul.f32 %v1894_v1, %v1894_v1 }
 0x11a   : > { %880 = vst [vmem:[%s1846_s5 + $0x150] sm:$0xff] %v1896_v2  ;;  %v779_v7 = vadd.f32 1.0, %v1379_v3  ;;  %v497_v8 = vpop.f32.mrf.mxu0  ;;  %v995_v62 = vadd.f32 %v994_v52, %v964_v43 }
 0x11b   : > { %v577_v10 = vpop.f32.mrf.mxu1  ;;  %1392 = vrcp.f32 %v763_v4  ;;  %v640_v11 = vadd.f32 %v1842_v26, %v497_v8  ;;  %v927_v8 = vadd.f32 %v926_v53, %v1894_v1 }
 0x11c   : > { %v656_v12 = vadd.f32 %v1842_v26, %v577_v10  ;;  %v1381_v13 = vpop.eup %1380  ;;  %1394 = vrcp.f32 %v779_v7  ;;  %v1910_v16 = vpop.f32.mrf.mxu0 }
 0x11d   : > { %v1912_v17 = vpop.f32.mrf.mxu1  ;;  %v1383_v18 = vpop.eup %1382  ;;  %v764_v20 = vadd.f32 1.0, %v1381_v13  ;;  %1396 = vpow2.f32 %v1238_v5  ;;  %v1239_v21 = vmul.f32 -1.442695, %v640_v11  ;;  %865 = vst [vmem:[%s1846_s5 + $0x60] sm:$0xff] %v1910_v16  ;;  %v966_v4 = vmul.f32 %v1910_v16, %v1910_v16 }
 0x11e   : > { %881 = vst [vmem:[%s1846_s5 + $0x160] sm:$0xff] %v1912_v17  ;;  %v780_v23 = vadd.f32 1.0, %v1383_v18  ;;  %v503_v24 = vpop.f32.mrf.mxu0  ;;  %1398 = vpow2.f32 %v1254_v9  ;;  %v1255_v28 = vmul.f32 -1.442695, %v656_v12  ;;  %v996_v12 = vadd.f32 %v995_v62, %v965_v60 }
 0x11f   : > { %v583_v29 = vpop.f32.mrf.mxu1  ;;  %1400 = vrcp.f32 %v764_v20  ;;  %v641_v25 = vadd.f32 %v1842_v26, %v503_v24  ;;  %v928_v15 = vadd.f32 %v927_v8, %v1910_v16 }
 0x120   : > { %v657_v31 = vadd.f32 %v1842_v26, %v583_v29  ;;  %v1385_v32 = vpop.eup %1384  ;;  %1402 = vrcp.f32 %v780_v23  ;;  %v1925_v36 = vpop.f32.mrf.mxu0  ;;  %v997_v23 = vadd.f32 %v996_v12, %v966_v4 }
 0x121   : > { %v1927_v37 = vpop.f32.mrf.mxu1  ;;  %v1387_v38 = vpop.eup %1386  ;;  %v765_v39 = vadd.f32 1.0, %v1385_v32  ;;  %1404 = vpow2.f32 %v1239_v21  ;;  %v1240_v40 = vmul.f32 -1.442695, %v641_v25  ;;  %866 = vst [vmem:[%s1846_s5 + $0x70] sm:$0xff] %v1925_v36  ;;  %v967_v18 = vmul.f32 %v1925_v36, %v1925_v36 }
 0x122   : > { %882 = vst [vmem:[%s1846_s5 + $0x170] sm:$0xff] %v1927_v37  ;;  %v781_v44 = vadd.f32 1.0, %v1387_v38  ;;  %v507_v45 = vpop.f32.mrf.mxu0  ;;  %1406 = vpow2.f32 %v1255_v28  ;;  %v1256_v46 = vmul.f32 -1.442695, %v657_v31  ;;  %v929_v34 = vadd.f32 %v928_v15, %v1925_v36 }
 0x123   : > { %v587_v47 = vpop.f32.mrf.mxu1  ;;  %1408 = vrcp.f32 %v765_v39  ;;  %v642_v50 = vadd.f32 %v1842_v26, %v507_v45  ;;  %v998_v39 = vadd.f32 %v997_v23, %v967_v18 }
 0x124   : > { %v658_v48 = vadd.f32 %v1842_v26, %v587_v47  ;;  %v1389_v51 = vpop.eup %1388  ;;  %1410 = vrcp.f32 %v781_v44  ;;  %v1939_v54 = vpop.f32.mrf.mxu0 }
 0x125   : > { %v1941_v55 = vpop.f32.mrf.mxu1  ;;  %v1391_v58 = vpop.eup %1390  ;;  %v766_v59 = vadd.f32 1.0, %v1389_v51  ;;  %1412 = vpow2.f32 %v1240_v40  ;;  %v1241_v61 = vmul.f32 -1.442695, %v642_v50  ;;  %867 = vst [vmem:[%s1846_s5 + $0x80] sm:$0xff] %v1939_v54  ;;  %v968_v16 = vmul.f32 %v1939_v54, %v1939_v54 }
 0x126   : > { %883 = vst [vmem:[%s1846_s5 + $0x180] sm:$0xff] %v1941_v55  ;;  %v782_v63 = vadd.f32 1.0, %v1391_v58  ;;  %v513_v56 = vpop.f32.mrf.mxu0  ;;  %1414 = vpow2.f32 %v1256_v46  ;;  %v1257_v0 = vmul.f32 -1.442695, %v658_v48  ;;  %v930_v47 = vadd.f32 %v929_v34, %v1939_v54 }
 0x127   : > { %v593_v3 = vpop.f32.mrf.mxu1  ;;  %1416 = vrcp.f32 %v766_v59  ;;  %v643_v5 = vadd.f32 %v1842_v26, %v513_v56  ;;  %v999_v51 = vadd.f32 %v998_v39, %v968_v16 }
 0x128   : > { %v659_v6 = vadd.f32 %v1842_v26, %v593_v3  ;;  %v1393_v7 = vpop.eup %1392  ;;  %1418 = vrcp.f32 %v782_v63  ;;  %v515_v9 = vpop.f32.mrf.mxu0 }
 0x129   : > { %v1954_v10 = vpop.f32.mrf.mxu1  ;;  %v1395_v11 = vpop.eup %1394  ;;  %891 = vst [vmem:[%s1846_s5 + $0x8] sm:$0xff] %v1393_v7  ;;  %1420 = vpow2.f32 %v1241_v61  ;;  %v1242_v13 = vmul.f32 -1.442695, %v643_v5  ;;  %868 = vst [vmem:[%s1846_s5 + $0x90] sm:$0xff] %v515_v9  ;;  %v969_v42 = vmul.f32 %v515_v9, %v515_v9  ;;  %v931_v60 = vadd.f32 %v930_v47, %v515_v9 }
 0x12a   : > { %884 = vst [vmem:[%s1846_s5 + $0x190] sm:$0xff] %v1954_v10  ;;  %v1397_v14 = vpop.eup %1396  ;;  %907 = vst [vmem:[%s1846_s5 + $0x108] sm:$0xff] %v1395_v11  ;;  %v517_v1 = vpop.f32.mrf.mxu0  ;;  %1422 = vpow2.f32 %v1257_v0  ;;  %v1258_v19 = vmul.f32 -1.442695, %v659_v6 }
 0x12b   : > { %v597_v20 = vpop.f32.mrf.mxu1  ;;  %v1399_v21 = vpop.eup %1398  ;;  %v767_v22 = vadd.f32 1.0, %v1397_v14  ;;  %1424 = vpow2.f32 %v1242_v13  ;;  %v644_v24 = vadd.f32 %v1842_v26, %v517_v1  ;;  %v1000_v62 = vadd.f32 %v999_v51, %v969_v42 }
 0x12c   : > { %v1401_v28 = vpop.eup %1400  ;;  %v783_v29 = vadd.f32 1.0, %v1399_v21  ;;  %v521_v30 = vpop.f32.mrf.mxu0  ;;  %1426 = vpow2.f32 %v1258_v19  ;;  %v660_v25 = vadd.f32 %v1842_v26, %v597_v20 }
 0x12d   : > { %v1968_v31 = vpop.f32.mrf.mxu1  ;;  %v1403_v32 = vpop.eup %1402  ;;  %892 = vst [vmem:[%s1846_s5 + $0x18] sm:$0xff] %v1401_v28  ;;  %1428 = vrcp.f32 %v767_v22  ;;  %v1243_v35 = vmul.f32 -1.442695, %v644_v24  ;;  %869 = vst [vmem:[%s1846_s5 + $0xa0] sm:$0xff] %v521_v30  ;;  %v970_v63 = vmul.f32 %v521_v30, %v521_v30  ;;  %v932_v6 = vadd.f32 %v931_v60, %v521_v30 }
 0x12e   : > { %885 = vst [vmem:[%s1846_s5 + $0x1a0] sm:$0xff] %v1968_v31  ;;  %v1405_v38 = vpop.eup %1404  ;;  %908 = vst [vmem:[%s1846_s5 + $0x118] sm:$0xff] %v1403_v32  ;;  %1430 = vrcp.f32 %v783_v29  ;;  %v523_v40 = vpop.f32.mrf.mxu0  ;;  %v1259_v43 = vmul.f32 -1.442695, %v660_v25 }
 0x12f   : > { %v603_v44 = vpop.f32.mrf.mxu1  ;;  %v1407_v45 = vpop.eup %1406  ;;  %v768_v46 = vadd.f32 1.0, %v1405_v38  ;;  %1432 = vpow2.f32 %v1243_v35  ;;  %v645_v36 = vadd.f32 %v1842_v26, %v523_v40  ;;  %v1001_v19 = vadd.f32 %v1000_v62, %v970_v63 }
 0x130   : > { %v1409_v50 = vpop.eup %1408  ;;  %v784_v48 = vadd.f32 1.0, %v1407_v45  ;;  %v525_v52 = vpop.f32.mrf.mxu0  ;;  %1434 = vpow2.f32 %v1259_v43  ;;  %v661_v53 = vadd.f32 %v1842_v26, %v603_v44 }
 0x131   : > { %v1979_v58 = vpop.f32.mrf.mxu1  ;;  %v1411_v59 = vpop.eup %1410  ;;  %893 = vst [vmem:[%s1846_s5 + $0x28] sm:$0xff] %v1409_v50  ;;  %1436 = vrcp.f32 %v768_v46  ;;  %v1244_v61 = vmul.f32 -1.442695, %v645_v36  ;;  %870 = vst [vmem:[%s1846_s5 + $0xb0] sm:$0xff] %v525_v52  ;;  %v971_v11 = vmul.f32 %v525_v52, %v525_v52  ;;  %v933_v20 = vadd.f32 %v932_v6, %v525_v52 }
 0x132   : > { %886 = vst [vmem:[%s1846_s5 + $0x1b0] sm:$0xff] %v1979_v58  ;;  %v1413_v54 = vpop.eup %1412  ;;  %909 = vst [vmem:[%s1846_s5 + $0x128] sm:$0xff] %v1411_v59  ;;  %1438 = vrcp.f32 %v784_v48  ;;  %v527_v56 = vpop.f32.mrf.mxu0  ;;  %v1260_v0 = vmul.f32 -1.442695, %v661_v53 }
 0x133   : > { %v607_v3 = vpop.f32.mrf.mxu1  ;;  %v1415_v4 = vpop.eup %1414  ;;  %v769_v5 = vadd.f32 1.0, %v1413_v54  ;;  %1440 = vpow2.f32 %v1244_v61  ;;  %v646_v7 = vadd.f32 %v1842_v26, %v527_v56  ;;  %v1002_v32 = vadd.f32 %v1001_v19, %v971_v11 }
 0x134   : > { %v1417_v8 = vpop.eup %1416  ;;  %v785_v9 = vadd.f32 1.0, %v1415_v4  ;;  %v531_v12 = vpop.f32.mrf.mxu0  ;;  %1442 = vpow2.f32 %v1260_v0  ;;  %v662_v13 = vadd.f32 %v1842_v26, %v607_v3 }
 0x135   : > { %v1988_v14 = vpop.f32.mrf.mxu1  ;;  %v1419_v15 = vpop.eup %1418  ;;  %894 = vst [vmem:[%s1846_s5 + $0x38] sm:$0xff] %v1417_v8  ;;  %1444 = vrcp.f32 %v769_v5  ;;  %v1245_v18 = vmul.f32 -1.442695, %v646_v7  ;;  %871 = vst [vmem:[%s1846_s5 + $0xc0] sm:$0xff] %v531_v12  ;;  %v972_v29 = vmul.f32 %v531_v12, %v531_v12  ;;  %v934_v40 = vadd.f32 %v933_v20, %v531_v12 }
 0x136   : > { %887 = vst [vmem:[%s1846_s5 + $0x1c0] sm:$0xff] %v1988_v14  ;;  %v1421_v1 = vpop.eup %1420  ;;  %910 = vst [vmem:[%s1846_s5 + $0x138] sm:$0xff] %v1419_v15  ;;  %1446 = vrcp.f32 %v785_v9  ;;  %v533_v21 = vpop.f32.mrf.mxu0  ;;  %v1261_v22 = vmul.f32 -1.442695, %v662_v13 }
 0x137   : > { %v613_v23 = vpop.f32.mrf.mxu1  ;;  %v1423_v24 = vpop.eup %1422  ;;  %v770_v28 = vadd.f32 1.0, %v1421_v1  ;;  %1448 = vpow2.f32 %v1245_v18  ;;  %v647_v16 = vadd.f32 %v1842_v26, %v533_v21  ;;  %v1003_v51 = vadd.f32 %v1002_v32, %v972_v29 }
 0x138   : > { %v1425_v30 = vpop.eup %1424  ;;  %v786_v25 = vadd.f32 1.0, %v1423_v24  ;;  %v535_v34 = vpop.f32.mrf.mxu0  ;;  %1450 = vpow2.f32 %v1261_v22  ;;  %v663_v35 = vadd.f32 %v1842_v26, %v613_v23 }
 0x139   : > { %v1997_v38 = vpop.f32.mrf.mxu1  ;;  %v1427_v39 = vpop.eup %1426  ;;  %1452 = vrcp.f32 %v770_v28  ;;  %v771_v42 = vadd.f32 1.0, %v1425_v30  ;;  %v1246_v43 = vmul.f32 -1.442695, %v647_v16  ;;  %872 = vst [vmem:[%s1846_s5 + $0xd0] sm:$0xff] %v535_v34  ;;  %v973_v46 = vmul.f32 %v535_v34, %v535_v34 }
 0x13a   : > { %888 = vst [vmem:[%s1846_s5 + $0x1d0] sm:$0xff] %v1997_v38  ;;  %v1429_v44 = vpop.eup %1428  ;;  %1454 = vrcp.f32 %v786_v25  ;;  %v787_v45 = vadd.f32 1.0, %v1427_v39  ;;  %v537_v47 = vpop.f32.mrf.mxu0  ;;  %v1262_v36 = vmul.f32 -1.442695, %v663_v35  ;;  %v935_v60 = vadd.f32 %v934_v40, %v535_v34 }
 0x13b   : > { %v617_v50 = vpop.f32.mrf.mxu1  ;;  %v1431_v48 = vpop.eup %1430  ;;  %895 = vst [vmem:[%s1846_s5 + $0x48] sm:$0xff] %v1429_v44  ;;  %1456 = vrcp.f32 %v771_v42  ;;  %v648_v52 = vadd.f32 %v1842_v26, %v537_v47  ;;  %v1004_v56 = vadd.f32 %v1003_v51, %v973_v46  ;;  %v976_v34 = vmul.f32 %v1844_v27, %v1844_v27 }
 0x13c   : > { %v664_v53 = vadd.f32 %v1842_v26, %v617_v50  ;;  %v1433_v59 = vpop.eup %1432  ;;  %911 = vst [vmem:[%s1846_s5 + $0x148] sm:$0xff] %v1431_v48  ;;  %1458 = vrcp.f32 %v787_v45  ;;  %v541_v61 = vpop.f32.mrf.mxu0  ;;  %v977_v40 = vmul.f32 %v1856_v33, %v1856_v33 }
 0x13d   : > { %v2006_v54 = vpop.f32.mrf.mxu1  ;;  %v1435_v62 = vpop.eup %1434  ;;  %v772_v63 = vadd.f32 1.0, %v1433_v59  ;;  %1460 = vpow2.f32 %v1246_v43  ;;  %v1247_v0 = vmul.f32 -1.442695, %v648_v52  ;;  %873 = vst [vmem:[%s1846_s5 + $0xe0] sm:$0xff] %v541_v61  ;;  %v974_v5 = vmul.f32 %v541_v61, %v541_v61 }
 0x13e   : > { %889 = vst [vmem:[%s1846_s5 + $0x1e0] sm:$0xff] %v2006_v54  ;;  %v1437_v3 = vpop.eup %1436  ;;  %v788_v4 = vadd.f32 1.0, %v1435_v62  ;;  %v543_v6 = vpop.f32.mrf.mxu0  ;;  %1462 = vpow2.f32 %v1262_v36  ;;  %v1263_v7 = vmul.f32 -1.442695, %v664_v53  ;;  %v936_v11 = vadd.f32 %v935_v60, %v541_v61 }
 0x13f   : > { %v623_v8 = vpop.f32.mrf.mxu1  ;;  %v1439_v9 = vpop.eup %1438  ;;  %896 = vst [vmem:[%s1846_s5 + $0x58] sm:$0xff] %v1437_v3  ;;  %1464 = vrcp.f32 %v772_v63  ;;  %v649_v12 = vadd.f32 %v1842_v26, %v543_v6  ;;  %v1005_v18 = vadd.f32 %v1004_v56, %v974_v5  ;;  %v978_v59 = vmul.f32 %v1866_v41, %v1866_v41 }
 0x140   : > { %v665_v13 = vadd.f32 %v1842_v26, %v623_v8  ;;  %v1441_v15 = vpop.eup %1440  ;;  %912 = vst [vmem:[%s1846_s5 + $0x158] sm:$0xff] %v1439_v9  ;;  %1466 = vrcp.f32 %v788_v4  ;;  %v545_v1 = vpop.f32.mrf.mxu0  ;;  %v979_v63 = vmul.f32 %v1876_v49, %v1876_v49  ;;  %v980_v5 = vmul.f32 %v1886_v57, %v1886_v57 }
 0x141   : > { %v2015_v19 = vpop.f32.mrf.mxu1  ;;  %v1443_v20 = vpop.eup %1442  ;;  %v773_v21 = vadd.f32 1.0, %v1441_v15  ;;  %1468 = vpow2.f32 %v1247_v0  ;;  %v1248_v22 = vmul.f32 -1.442695, %v649_v12  ;;  %874 = vst [vmem:[%s1846_s5 + $0xf0] sm:$0xff] %v545_v1  ;;  %v937_v23 = vadd.f32 %v936_v11, %v545_v1 }
 0x142   : > { %890 = vst [vmem:[%s1846_s5 + $0x1f0] sm:$0xff] %v2015_v19  ;;  %v1445_v24 = vpop.eup %1444  ;;  %v789_v28 = vadd.f32 1.0, %v1443_v20  ;;  %v975_v29 = vmul.f32 %v545_v1, %v545_v1  ;;  %v547_v16 = vpop.f32.mrf.mxu0  ;;  %1470 = vpow2.f32 %v1263_v7  ;;  %v1264_v30 = vmul.f32 -1.442695, %v665_v13 }
 0x143   : > { %v627_v25 = vpop.f32.mrf.mxu1  ;;  %v1447_v32 = vpop.eup %1446  ;;  %897 = vst [vmem:[%s1846_s5 + $0x68] sm:$0xff] %v1445_v24  ;;  %1472 = vrcp.f32 %v773_v21  ;;  %v938_v35 = vadd.f32 %v937_v23, %v1844_v27  ;;  %v650_v39 = vadd.f32 %v1842_v26, %v547_v16  ;;  %v981_v11 = vmul.f32 %v1896_v2, %v1896_v2 }
 0x144   : > { %v1449_v42 = vpop.eup %1448  ;;  %913 = vst [vmem:[%s1846_s5 + $0x168] sm:$0xff] %v1447_v32  ;;  %1474 = vrcp.f32 %v789_v28  ;;  %v1006_v43 = vadd.f32 %v1005_v18, %v975_v29  ;;  %v666_v44 = vadd.f32 %v1842_v26, %v627_v25  ;;  %v982_v1 = vmul.f32 %v1912_v17, %v1912_v17 }
 0x145   : > { %v1451_v45 = vpop.eup %1450  ;;  %v774_v46 = vadd.f32 1.0, %v1449_v42  ;;  %1476 = vpow2.f32 %v1248_v22  ;;  %v939_v47 = vadd.f32 %v938_v35, %v1856_v33  ;;  %v1249_v36 = vmul.f32 -1.442695, %v650_v39 }
 0x146   : > { %v1453_v27 = vpop.eup %1452  ;;  %v790_v50 = vadd.f32 1.0, %v1451_v45  ;;  %v1007_v48 = vadd.f32 %v1006_v43, %v976_v34  ;;  %1478 = vpow2.f32 %v1264_v30  ;;  %v1265_v51 = vmul.f32 -1.442695, %v666_v44 }
 0x147   : > { %v1455_v52 = vpop.eup %1454  ;;  %898 = vst [vmem:[%s1846_s5 + $0x78] sm:$0xff] %v1453_v27  ;;  %1480 = vrcp.f32 %v774_v46  ;;  %v940_v53 = vadd.f32 %v939_v47, %v1866_v41  ;;  %v983_v24 = vmul.f32 %v1927_v37, %v1927_v37  ;;  %v984_v25 = vmul.f32 %v1941_v55, %v1941_v55 }
 0x148   : > { %v1457_v26 = vpop.eup %1456  ;;  %914 = vst [vmem:[%s1846_s5 + $0x178] sm:$0xff] %v1455_v52  ;;  %1482 = vrcp.f32 %v790_v50  ;;  %v1008_v33 = vadd.f32 %v1007_v48, %v977_v40  ;;  %v985_v42 = vmul.f32 %v1954_v10, %v1954_v10  ;;  %v986_v45 = vmul.f32 %v1968_v31, %v1968_v31 }
 0x149   : > { %v1459_v60 = vpop.eup %1458  ;;  %899 = vst [vmem:[%s1846_s5 + $0x88] sm:$0xff] %v1457_v26  ;;  %v941_v61 = vadd.f32 %v940_v53, %v1876_v49  ;;  %1484 = vpow2.f32 %v1249_v36 }
 0x14a   : > { %v1461_v62 = vpop.eup %1460  ;;  %915 = vst [vmem:[%s1846_s5 + $0x188] sm:$0xff] %v1459_v60  ;;  %v1009_v56 = vadd.f32 %v1008_v33, %v978_v59  ;;  %1486 = vpow2.f32 %v1265_v51 }
 0x14b   : > { %v1463_v0 = vpop.eup %1462  ;;  %v775_v3 = vadd.f32 1.0, %v1461_v62  ;;  %v942_v41 = vadd.f32 %v941_v61, %v1886_v57 }
 0x14c   : > { %v1465_v4 = vpop.eup %1464  ;;  %v791_v6 = vadd.f32 1.0, %v1463_v0  ;;  %v1010_v7 = vadd.f32 %v1009_v56, %v979_v63  ;;  %v991_v0 = vmul.f32 %v2015_v19, %v2015_v19 }
 0x14d   : > { %v1467_v8 = vpop.eup %1466  ;;  %900 = vst [vmem:[%s1846_s5 + $0x98] sm:$0xff] %v1465_v4  ;;  %1488 = vrcp.f32 %v775_v3  ;;  %v943_v49 = vadd.f32 %v942_v41, %v1896_v2 }
 0x14e   : > { %v1469_v9 = vpop.eup %1468  ;;  %916 = vst [vmem:[%s1846_s5 + $0x198] sm:$0xff] %v1467_v8  ;;  %1490 = vrcp.f32 %v791_v6  ;;  %v1011_v12 = vadd.f32 %v1010_v7, %v980_v5 }
 0x14f   : > { %v1471_v13 = vpop.eup %1470  ;;  %v776_v15 = vadd.f32 1.0, %v1469_v9  ;;  %v944_v57 = vadd.f32 %v943_v49, %v1912_v17 }
 0x150   : > { %v1473_v18 = vpop.eup %1472  ;;  %v1012_v20 = vadd.f32 %v1011_v12, %v981_v11  ;;  %v792_v21 = vadd.f32 1.0, %v1471_v13 }
 0x151   : > { %v1475_v22 = vpop.eup %1474  ;;  %901 = vst [vmem:[%s1846_s5 + $0xa8] sm:$0xff] %v1473_v18  ;;  %1492 = vrcp.f32 %v776_v15  ;;  %v945_v2 = vadd.f32 %v944_v57, %v1927_v37 }
 0x152   : > { %v1477_v23 = vpop.eup %1476  ;;  %917 = vst [vmem:[%s1846_s5 + $0x1a8] sm:$0xff] %v1475_v22  ;;  %v1013_v28 = vadd.f32 %v1012_v20, %v982_v1  ;;  %1494 = vrcp.f32 %v792_v21 }
 0x153   : > { %v1479_v29 = vpop.eup %1478  ;;  %v777_v16 = vadd.f32 1.0, %v1477_v23  ;;  %v946_v17 = vadd.f32 %v945_v2, %v1941_v55 }
 0x154   : > { %v1481_v30 = vpop.eup %1480  ;;  %v1014_v32 = vadd.f32 %v1013_v28, %v983_v24  ;;  %v793_v34 = vadd.f32 1.0, %v1479_v29 }
 0x155   : > { %v1483_v35 = vpop.eup %1482  ;;  %902 = vst [vmem:[%s1846_s5 + $0xb8] sm:$0xff] %v1481_v30  ;;  %1496 = vrcp.f32 %v777_v16  ;;  %v947_v39 = vadd.f32 %v946_v17, %v1954_v10  ;;  %v987_v10 = vmul.f32 %v1979_v58, %v1979_v58 }
 0x156   : > { %v1485_v37 = vpop.eup %1484  ;;  %918 = vst [vmem:[%s1846_s5 + $0x1b8] sm:$0xff] %v1483_v35  ;;  %v1015_v40 = vadd.f32 %v1014_v32, %v984_v25  ;;  %1498 = vrcp.f32 %v793_v34 }
 0x157   : > { %v1487_v43 = vpop.eup %1486  ;;  %v948_v44 = vadd.f32 %v947_v39, %v1968_v31  ;;  %v778_v55 = vadd.f32 1.0, %v1485_v37  ;;  %v988_v31 = vmul.f32 %v1988_v14, %v1988_v14 }
 0x158   : > { %v1016_v46 = vadd.f32 %v1015_v40, %v985_v42  ;;  %v794_v47 = vadd.f32 1.0, %v1487_v43 }
 0x159   : > { %v949_v36 = vadd.f32 %v948_v44, %v1979_v58  ;;  %1500 = vrcp.f32 %v778_v55  ;;  %v989_v58 = vmul.f32 %v1997_v38, %v1997_v38 }
 0x15a   : > { %v1489_v27 = vpop.eup %1488  ;;  %v1017_v50 = vadd.f32 %v1016_v46, %v986_v45  ;;  %1502 = vrcp.f32 %v794_v47 }
 0x15b   : > { %v1491_v48 = vpop.eup %1490  ;;  %903 = vst [vmem:[%s1846_s5 + $0xc8] sm:$0xff] %v1489_v27  ;;  %v950_v51 = vadd.f32 %v949_v36, %v1988_v14  ;;  %v990_v14 = vmul.f32 %v2006_v54, %v2006_v54 }
 0x15c   : > { %919 = vst [vmem:[%s1846_s5 + $0x1c8] sm:$0xff] %v1491_v48  ;;  %v1018_v52 = vadd.f32 %v1017_v50, %v987_v10 }
 0x15d   : > { %v951_v53 = vadd.f32 %v950_v51, %v1997_v38 }
 0x15e   : > { %v1493_v26 = vpop.eup %1492  ;;  %v1019_v59 = vadd.f32 %v1018_v52, %v988_v31 }
 0x15f   : > { %v1495_v33 = vpop.eup %1494  ;;  %904 = vst [vmem:[%s1846_s5 + $0xd8] sm:$0xff] %v1493_v26  ;;  %v952_v60 = vadd.f32 %v951_v53, %v2006_v54 }
 0x160   : > { %v1020_v61 = vadd.f32 %v1019_v59, %v989_v58  ;;  %920 = vst [vmem:[%s1846_s5 + $0x1d8] sm:$0xff] %v1495_v33 }
 0x161   : > { %v953_v62 = vadd.f32 %v952_v60, %v2015_v19 }
 0x162   : > { %v1497_v63 = vpop.eup %1496  ;;  %v1021_v56 = vadd.f32 %v1020_v61, %v990_v14 }
 0x163   : > { %v1499_v38 = vpop.eup %1498  ;;  %905 = vst [vmem:[%s1846_s5 + $0xe8] sm:$0xff] %v1497_v63  ;;  %v954_v3 = vrot.slane %v953_v62, 4 }
 0x164   : > { %921 = vst [vmem:[%s1846_s5 + $0x1e8] sm:$0xff] %v1499_v38  ;;  %v1022_v41 = vadd.f32 %v1021_v56, %v991_v0 }
 0x165   : > { %v955_v54 = vadd.f32 %v954_v3, %v953_v62 }
 0x166   : > { %v1501_v19 = vpop.eup %1500  ;;  %v1023_v4 = vrot.slane %v1022_v41, 4 }
 0x167   : > { %v1503_v5 = vpop.eup %1502  ;;  %906 = vst [vmem:[%s1846_s5 + $0xf8] sm:$0xff] %v1501_v19  ;;  %v956_v6 = vrot.slane %v955_v54, 2 }
 0x168   : > { %v1024_v7 = vadd.f32 %v1023_v4, %v1022_v41  ;;  %922 = vst [vmem:[%s1846_s5 + $0x1f8] sm:$0xff] %v1503_v5 }
 0x169   : > { %v957_v8 = vadd.f32 %v956_v6, %v955_v54 }
 0x16a   : > { %1569 = shalt.err (!%p1566_p3)
}
 0x16b   : > { %s1570_s23 = scalar_lea.hbm %s2093_s10, 8192  ;;  %s1574_s30 = scalar_lea.hbm %s2169_s3, 65536 }
 0x16c   : > { %p1571_p2 = scmp.ne.s32.totalorder %s2093_s10, %s1570_s23  ;;  %p1575_p7 = scmp.lt.s32.totalorder %s2093_s10, %s2169_s3 }
 0x16d   : > { %p1576_p6 = scmp.lt.s32.totalorder %s1574_s30, %s1570_s23 }
 0x16e   : > { %p1572_p4 = pnand %p1571_p2, %p1728_p5 }
 0x16f   : > { %p1577_p9 = por %p1576_p6, %p1575_p7 }
 0x170   : > { %p1573_p13 = pneg %p1572_p4 }
 0x172   : > { %p1578_p10 = pnand %p1577_p9, %p1573_p13 }
 0x174   : > { %1581 = shalt.err (!%p1578_p10)
}
 0x175   : > { %s1662_s8 = smov 256   ;;  %s1663_s9 = smov 16   ;;  %v1025_v49 = vrot.slane %v1024_v7, 2  ;;  %v958_v9 = vrot.slane %v957_v8, 1  ;;  %vm1029_vm2 = vcmask 1040384  }
 0x176   : > { %1290 = dma.vmem_to_hbm [thread:$0]  (%p1728_p5), %s2095_s7, 8192, %s2093_s10, %s1034_s12, %s1662_s8, %s1662_s8, %s1663_s9  }
 0x177   : > { %v1026_v11 = vadd.f32 %v1025_v49, %v1024_v7  ;;  %s1271_s13 = sshll.u32 %s1711_s19, 7  ;;  %s230_s14 = scalar_lea.vmem [#allocation8], %s1191_s11  ;;  %v959_v13 = vadd.f32 %v958_v9, %v957_v8 }
 0x178   : > { %s1069_s20 = sshll.u32 %s230_s14, 4  ;;  %s2129_s27 = scalar_lea.hbm %s2170_s4, %s1271_s13  ;;  %s1070_s20 = int_to_ptr.vmem [resolvable:$true] %s1069_s20 }
 0x179   : > { %v1027_v12 = vrot.slane %v1026_v11, 1  ;;  %s1039_s7 = scalar_lea.sflag [#allocation9], %s1837_s29  ;;  %s1582_s10 = scalar_lea.vmem %s1070_s20, 128 }
 0x17a   : > { %p1583_p12 = scmp.ne.s32.totalorder %s1070_s20, %s1582_s10  ;;  %s1664_s19 = smov [#allocation8]  }
 0x17b   : > { %v1028_v15 = vadd.f32 %v1027_v12, %v1026_v11  ;;  %s1586_s11 = sshll.u32 %s1664_s19, 4  ;;  %s1587_s11 = int_to_ptr.vmem [resolvable:$false] %s1586_s11 }
 0x17c   : > { %p1584_p8 = pnand %p1583_p12, %p1728_p5  ;;  %s1588_s12 = scalar_lea.vmem %s1587_s11, 256 }
 0x17d   : > { %v1030_v57 = vsel %vm1029_vm2, %v959_v13, %v1028_v15  ;;  %p1589_p0 = scmp.lt.s32.totalorder %s1070_s20, %s1587_s11  ;;  %p1590_p1 = scmp.lt.s32.totalorder %s1588_s12, %s1582_s10 }
 0x17e   : > { %v1031_v18 = vsel %vm430_vm0, %v1030_v57, 0.0  ;;  %p1585_p11 = pneg %p1584_p8 }
 0x17f   : > { %1032 = vst [vmem:[%s230_s14] sm:$0xff] %v1031_v18  ;;  %p1591_p3 = por %p1590_p1, %p1589_p0 }
 0x181   : > { %p1592_p2 = pnand %p1591_p3, %p1585_p11 }
 0x183   : > { %1595 = shalt.err (!%p1592_p2)
}
 0x184   : > { %s1596_s28 = scalar_lea.hbm %s2129_s27, 128  ;;  %s1600_s5 = scalar_lea.hbm %s2170_s4, 1024 }
 0x185   : > { %p1597_p4 = scmp.ne.s32.totalorder %s2129_s27, %s1596_s28  ;;  %p1601_p6 = scmp.lt.s32.totalorder %s2129_s27, %s2170_s4 }
 0x186   : > { %p1602_p9 = scmp.lt.s32.totalorder %s1600_s5, %s1596_s28 }
 0x187   : > { %p1598_p13 = pnand %p1597_p4, %p1728_p5 }
 0x188   : > { %p1603_p10 = por %p1602_p9, %p1601_p6 }
 0x189   : > { %p1599_p7 = pneg %p1598_p13 }
 0x18b   : > { %p1604_p12 = pnand %p1603_p10, %p1599_p7 }
 0x18d   : > { %1607 = shalt.err (!%p1604_p12)
}
 0x18e   : > { %1291 = dma.vmem_to_hbm [thread:$0]  (%p1728_p5), %s1070_s20, 128, %s2129_s27, %s1039_s7  }
 0x18f PF: > { %p1312_p8 = scmp.ge.s32.totalorder %s1654_s18, 2  ;;  %s1081_s9 = sand.u32 1, %s1642_s15  }
 0x190   : > { %p2180_p11 = scmp.ne.s32.totalorder %s2173_s26, 0  ;;  %s1082_s13 = scalar_lea.sflag [#allocation4], %s1081_s9 }
 0x192   : > { %p1302_p0 = pnand %p1312_p8, %p2180_p11 }
 0x194   : > { %p1303_p1 = pneg %p1302_p0 }
 0x196   : > { %1633 = dma.done.wait (%p1303_p1), %s1082_s13, 8192  }
 0x197   : > { %1635 = vsyncadd (%p1303_p1), %s1082_s13, 4294959104  ;;  %s1091_s14 = scalar_lea.sflag [#allocation9], %s1081_s9 }
 0x198   : > { %1637 = dma.done.wait (%p1303_p1), %s1091_s14, 128  }
 0x199   : > { %1639 = vsyncadd (%p1303_p1), %s1091_s14, 4294967168  ;;  %p20_p5 = scmp.ge.s32.totalorder %s1715_s21, 10   ;;  %s2181_s15 = smov %s1646_s16 }
 0x19a   : > { %s2182_s16 = smov %s1650_s17  ;;  %s2183_s17 = smov %s1726_s24 }
 0x19b   : > { %s2184_s18 = smov %s1715_s21  ;;  %22 = sbr.rel (!%p20_p5) target bundleno = 7 (0x7), region = 93 }
 0x1a0   :  { %1096 = vsyncpa [#allocation3], 1 }
 0x1a1   :  { %1098 = vsyncpa [#allocation3 + $0x1], 1 }
 0x1a2   :  { %1099 = vsyncpa [#allocation6], 1 }
 0x1a3   :  { %1100 = vsyncpa [#allocation4], 1 }
 0x1a4   :  { %1102 = vsyncpa [#allocation4 + $0x1], 1 }
 0x1a5   :  { %1103 = vsyncpa [#allocation9], 1 }
 0x1a6   :  { %1105 = vsyncpa [#allocation9 + $0x1], 1 }

</bundles_post_ra>
